<compile_context>
chip_gen: v5e
topology: v5e:2x2
jax: 0.10.0
libtpu: 0.0.40
codegen_flags: <defaults>
</compile_context>

<pallas_src>
import functools

import jax
import jax.numpy as jnp
import numpy as np
from jax.experimental import pallas as pl
from jax.experimental.pallas import tpu as pltpu


def _conv_bn_relu_kernel(x_ref, w_ref, b_ref, m_ref, o_ref, xw_ref, s_ref, *,
                         offsets, lpad, hw, cin, apply_relu):
    """One image per grid step.

    x_ref : (1, Cin, H*W)        f32   input, spatial flattened into lanes
    w_ref : (Cout, K*K*Cin)      bf16  BN-folded conv weight (im2col layout)
    b_ref : (Cout, 1)            f32   BN-folded bias
    m_ref : (K*K*Cin, H*W)       f32   0/1 tap-validity mask (conv zero pad)
    o_ref : (1, Cout, H*W)       f32   output, lane-dense stores
    xw_ref: (Cin, H*W + 2*lpad)  f32   scratch: lane-widened image, zero border
    s_ref : (K*K*Cin, H*W)       f32   scratch: im2col slab
    """
    # Widened copy of the image: zero only the border strips (lpad lanes per
    # side); the interior is fully overwritten with this step's image.
    if lpad > 0:
        xw_ref[:, 0:lpad] = jnp.zeros((cin, lpad), jnp.float32)
        xw_ref[:, lpad + hw:lpad + hw + lpad] = jnp.zeros((cin, lpad),
                                                          jnp.float32)
    xw_ref[:, lpad:lpad + hw] = x_ref[0]

    # im2col: every conv tap (ky, kx) is a static lane shift of the widened
    # image; write it into its row block of the im2col slab.
    for ti, off in enumerate(offsets):
        s_ref[ti * cin:(ti + 1) * cin, :] = \
            xw_ref[:, lpad + off:lpad + off + hw]

    # Zero taps that fall outside the (zero-padded) image, then one fused MXU
    # matmul over the whole K*K*Cin contraction: bf16 in, f32 accumulate.
    s = (s_ref[...] * m_ref[...]).astype(jnp.bfloat16)
    acc = jnp.dot(w_ref[...], s, preferred_element_type=jnp.float32)
    acc = acc + b_ref[...]
    if apply_relu:
        acc = jnp.maximum(acc, 0.0)
    o_ref[0] = acc.astype(o_ref.dtype)


def dilated_conv_bn_relu(x_nchw, weight, gamma, beta, mean, var, *,
                         stride=1, padding=0, dilation=1, eps=1e-5,
                         apply_relu=True):
    """Fused dilated Conv2d(bias=False) + BatchNorm2d (eval) + optional ReLU.

    x_nchw: (N, Cin, H, W) f32.  weight: (Cout, Cin, K, K) (PyTorch OIHW).
    Returns (N, Cout, H_out, W_out) f32.
    """
    N, Cin, H, W = x_nchw.shape
    Cout, Cin_w, KH, KW = weight.shape
    assert Cin_w == Cin and KH == KW, "square kernels, matching channels only"
    K = KH
    s = stride[0] if isinstance(stride, (tuple, list)) else stride
    p = padding[0] if isinstance(padding, (tuple, list)) else padding
    d = dilation[0] if isinstance(dilation, (tuple, list)) else dilation
    assert s == 1, "TODO(synk): stride > 1 not supported"
    H_out = H + 2 * p - d * (K - 1)
    W_out = W + 2 * p - d * (K - 1)
    assert 1 <= H_out <= H and 1 <= W_out <= W, (
        "kernel computes on the input grid; output size must be <= input size")

    HW = H * W

    # ---- fold BatchNorm (inference) into conv weight + per-channel bias ----
    scale = gamma / jnp.sqrt(var + eps)                        # (Cout,)
    w_fold = weight * scale[:, None, None, None]               # (Cout,Cin,K,K)
    bias = (beta - mean * scale).reshape(Cout, 1).astype(jnp.float32)

    # im2col weight layout: row index = (ky*K + kx)*Cin + ci.  Cast to bf16
    # once here (MXU-native dtype), not per grid step.
    w_mat = jnp.transpose(w_fold, (0, 2, 3, 1)).reshape(Cout, K * K * Cin)
    w_mat = w_mat.astype(jnp.bfloat16)

    # ---- static per-tap lane shifts and validity masks --------------------
    offsets, mask_rows = [], []
    yy = np.arange(H)[:, None]                                 # (H, 1)
    xx = np.arange(W)[None, :]                                 # (1, W)
    for ky in range(K):
        for kx in range(K):
            dy, dx = ky * d - p, kx * d - p
            offsets.append(dy * W + dx)
            valid = ((yy + dy >= 0) & (yy + dy < H) &
                     (xx + dx >= 0) & (xx + dx < W))           # (H, W)
            mask_rows.append(np.broadcast_to(valid.reshape(1, HW), (Cin, HW)))
    masks = jnp.asarray(np.concatenate(mask_rows, axis=0), dtype=jnp.float32)

    lmax = max(abs(o) for o in offsets)
    lpad = ((lmax + 127) // 128) * 128 if lmax > 0 else 0

    # NCHW stays NCHW: only free reshapes at the boundary (no HBM transposes).
    x3 = x_nchw.reshape(N, Cin, HW).astype(jnp.float32)

    kernel = functools.partial(
        _conv_bn_relu_kernel, offsets=tuple(offsets), lpad=lpad, hw=HW,
        cin=Cin, apply_relu=apply_relu)

    # NOTE: at these shapes one image is a single (C, 256)-lane slab, so the
    # grid is just (N,).  For large H*W, add a second "parallel" grid axis
    # tiling H (with a d*(K-1)-row halo) so both TensorCores get several
    # pipeline steps and the per-step VMEM stays bounded (v7x: 64 MiB).
    out = pl.pallas_call(
        kernel,
        out_shape=jax.ShapeDtypeStruct((N, Cout, HW), jnp.float32),
        grid_spec=pltpu.PrefetchScalarGridSpec(
            num_scalar_prefetch=0,
            grid=(N,),
            in_specs=[
                pl.BlockSpec((1, Cin, HW), lambda n: (n, 0, 0)),
                pl.BlockSpec((Cout, K * K * Cin), lambda n: (0, 0)),
                pl.BlockSpec((Cout, 1), lambda n: (0, 0)),
                pl.BlockSpec((K * K * Cin, HW), lambda n: (0, 0)),
            ],
            out_specs=pl.BlockSpec((1, Cout, HW), lambda n: (n, 0, 0)),
            scratch_shapes=[
                pltpu.VMEM((Cin, HW + 2 * lpad), jnp.float32),
                pltpu.VMEM((K * K * Cin, HW), jnp.float32),
            ],
        ),
        compiler_params=pltpu.CompilerParams(
            dimension_semantics=("parallel",)),
    )(x3, w_mat, bias, masks)

    out = out.reshape(N, Cout, H, W)
    if (H_out, W_out) != (H, W):
        out = out[:, :, :H_out, :W_out]
    return out


def reference(x_nchw, weight, gamma, beta, mean, var, *, stride, padding,
              dilation, eps=1e-5, apply_relu=True, matmul_dtype=jnp.float32):
    """Plain-JAX reference of the same folded-BN math (XLA conv)."""
    scale = gamma / jnp.sqrt(var + eps)
    w_fold = (weight * scale[:, None, None, None]).astype(matmul_dtype)
    bias = (beta - mean * scale).reshape(1, -1, 1, 1)
    y = jax.lax.conv_general_dilated(
        x_nchw.astype(matmul_dtype), w_fold,
        window_strides=(stride, stride),
        padding=[(padding, padding), (padding, padding)],
        rhs_dilation=(dilation, dilation),
        dimension_numbers=('NCHW', 'OIHW', 'NCHW'),
        preferred_element_type=jnp.float32)
    y = y + bias
    return jnp.maximum(y, 0.0) if apply_relu else y


if __name__ == "__main__":
    key = jax.random.PRNGKey(0)
    kx, kw, kg, kb, km, kv = jax.random.split(key, 6)

    N, Cin, H, W = 2, 4, 16, 16
    Cout, K, dilation = 16, 3, 2
    padding = dilation * (K - 1) // 2            # "same"-size dilated conv

    x = jax.random.normal(kx, (N, Cin, H, W), jnp.float32)
    weight = 0.3 * jax.random.normal(kw, (Cout, Cin, K, K), jnp.float32)
    gamma = 1.0 + 0.1 * jax.random.normal(kg, (Cout,), jnp.float32)
    beta = 0.1 * jax.random.normal(kb, (Cout,), jnp.float32)
    mean = 0.1 * jax.random.normal(km, (Cout,), jnp.float32)
    var = jnp.abs(jax.random.normal(kv, (Cout,), jnp.float32)) + 0.5

    out = dilated_conv_bn_relu(x, weight, gamma, beta, mean, var,
                               stride=1, padding=padding, dilation=dilation)
    out = jax.block_until_ready(out)
    assert out.shape == (N, Cout, H, W), out.shape

    # The kernel uses bf16 MXU operands with f32 accumulation; compare against
    # a reference at the same operand precision (tight), and against a pure
    # f32 reference (loose) to bound the bf16 rounding error.
    ref_bf16 = reference(x, weight, gamma, beta, mean, var, stride=1,
                         padding=padding, dilation=dilation,
                         matmul_dtype=jnp.bfloat16)
    err = jnp.max(jnp.abs(out - ref_bf16))
    assert jnp.allclose(out, ref_bf16, atol=2e-3, rtol=2e-3), f"max err {err}"

    ref_f32 = reference(x, weight, gamma, beta, mean, var, stride=1,
                        padding=padding, dilation=dilation,
                        matmul_dtype=jnp.float32)
    err32 = jnp.max(jnp.abs(out - ref_f32))
    assert jnp.allclose(out, ref_f32, atol=5e-2, rtol=5e-2), \
        f"max err vs f32 ref {err32}"

    print("KERNEL_OK")
</pallas_src>

<mosaic_0001>
module attributes {stable_mosaic.version = 11 : i64} {
  func.func @_conv_bn_relu_kernel(%arg0: i32, %arg1: memref<1x4x256xf32, #tpu.memory_space<vmem>>, %arg2: memref<16x36xbf16, #tpu.memory_space<vmem>>, %arg3: memref<16x1xf32, #tpu.memory_space<vmem>>, %arg4: memref<36x256xf32, #tpu.memory_space<vmem>>, %arg5: memref<1x16x256xf32, #tpu.memory_space<vmem>>, %arg6: memref<4x512xf32, #tpu.memory_space<vmem>>, %arg7: memref<36x256xf32, #tpu.memory_space<vmem>>) attributes {dimension_semantics = [#tpu.dimension_semantics<parallel>], iteration_bounds = array<i64: 2>, scalar_prefetch = 0 : i64, scratch_operands = 2 : i64, tpu.core_type = #tpu.core_type<tc>, window_params = [{transform_indices = @transform_0, window_bounds = array<i64: 1, 4, 256>}, {pipeline_mode = #tpu.pipeline_mode<synchronous>, transform_indices = @transform_1, window_bounds = array<i64: 16, 36>}, {pipeline_mode = #tpu.pipeline_mode<synchronous>, transform_indices = @transform_2, window_bounds = array<i64: 16, 1>}, {pipeline_mode = #tpu.pipeline_mode<synchronous>, transform_indices = @transform_3, window_bounds = array<i64: 36, 256>}, {transform_indices = @transform_4, window_bounds = array<i64: 1, 16, 256>}]} {
    %cst = arith.constant 0.000000e+00 : f32
    %0 = vector.broadcast %cst : f32 to vector<4x128xf32>
    %c0 = arith.constant 0 : index
    %c0_0 = arith.constant 0 : index
    %1 = vector.load %arg6[%c0, %c0_0] : memref<4x512xf32, #tpu.memory_space<vmem>>, vector<4x128xf32>
    tpu.vector_store %arg6[%c0, %c0_0], %0 {strides = array<i32>} : memref<4x512xf32, #tpu.memory_space<vmem>>, vector<4x128xf32>,
    %cst_1 = arith.constant 0.000000e+00 : f32
    %2 = vector.broadcast %cst_1 : f32 to vector<4x128xf32>
    %c0_2 = arith.constant 0 : index
    %c384 = arith.constant 384 : index
    %3 = vector.load %arg6[%c0_2, %c384] : memref<4x512xf32, #tpu.memory_space<vmem>>, vector<4x128xf32>
    tpu.vector_store %arg6[%c0_2, %c384], %2 {strides = array<i32>} : memref<4x512xf32, #tpu.memory_space<vmem>>, vector<4x128xf32>,
    %c0_3 = arith.constant 0 : index
    %c0_4 = arith.constant 0 : index
    %c0_5 = arith.constant 0 : index
    %4 = vector.load %arg1[%c0_3, %c0_4, %c0_5] : memref<1x4x256xf32, #tpu.memory_space<vmem>>, vector<1x4x256xf32>
    %5 = vector.shape_cast %4 : vector<1x4x256xf32> to vector<4x256xf32>
    %c0_6 = arith.constant 0 : index
    %c128 = arith.constant 128 : index
    %6 = vector.load %arg6[%c0_6, %c128] : memref<4x512xf32, #tpu.memory_space<vmem>>, vector<4x256xf32>
    tpu.vector_store %arg6[%c0_6, %c128], %5 {strides = array<i32>} : memref<4x512xf32, #tpu.memory_space<vmem>>, vector<4x256xf32>,
    %c0_7 = arith.constant 0 : index
    %c94 = arith.constant 94 : index
    %7 = vector.load %arg6[%c0_7, %c94] : memref<4x512xf32, #tpu.memory_space<vmem>>, vector<4x256xf32>
    %c0_8 = arith.constant 0 : index
    %c0_9 = arith.constant 0 : index
    %8 = vector.load %arg7[%c0_8, %c0_9] : memref<36x256xf32, #tpu.memory_space<vmem>>, vector<4x256xf32>
    tpu.vector_store %arg7[%c0_8, %c0_9], %7 {strides = array<i32>} : memref<36x256xf32, #tpu.memory_space<vmem>>, vector<4x256xf32>,
    %c0_10 = arith.constant 0 : index
    %c96 = arith.constant 96 : index
    %9 = vector.load %arg6[%c0_10, %c96] : memref<4x512xf32, #tpu.memory_space<vmem>>, vector<4x256xf32>
    %c4 = arith.constant 4 : index
    %c0_11 = arith.constant 0 : index
    %10 = vector.load %arg7[%c4, %c0_11] : memref<36x256xf32, #tpu.memory_space<vmem>>, vector<4x256xf32>
    tpu.vector_store %arg7[%c4, %c0_11], %9 {strides = array<i32>} : memref<36x256xf32, #tpu.memory_space<vmem>>, vector<4x256xf32>,
    %c0_12 = arith.constant 0 : index
    %c98 = arith.constant 98 : index
    %11 = vector.load %arg6[%c0_12, %c98] : memref<4x512xf32, #tpu.memory_space<vmem>>, vector<4x256xf32>
    %c8 = arith.constant 8 : index
    %c0_13 = arith.constant 0 : index
    %12 = vector.load %arg7[%c8, %c0_13] : memref<36x256xf32, #tpu.memory_space<vmem>>, vector<4x256xf32>
    tpu.vector_store %arg7[%c8, %c0_13], %11 {strides = array<i32>} : memref<36x256xf32, #tpu.memory_space<vmem>>, vector<4x256xf32>,
    %c0_14 = arith.constant 0 : index
    %c126 = arith.constant 126 : index
    %13 = vector.load %arg6[%c0_14, %c126] : memref<4x512xf32, #tpu.memory_space<vmem>>, vector<4x256xf32>
    %c12 = arith.constant 12 : index
    %c0_15 = arith.constant 0 : index
    %14 = vector.load %arg7[%c12, %c0_15] : memref<36x256xf32, #tpu.memory_space<vmem>>, vector<4x256xf32>
    tpu.vector_store %arg7[%c12, %c0_15], %13 {strides = array<i32>} : memref<36x256xf32, #tpu.memory_space<vmem>>, vector<4x256xf32>,
    %c0_16 = arith.constant 0 : index
    %c128_17 = arith.constant 128 : index
    %15 = vector.load %arg6[%c0_16, %c128_17] : memref<4x512xf32, #tpu.memory_space<vmem>>, vector<4x256xf32>
    %c16 = arith.constant 16 : index
    %c0_18 = arith.constant 0 : index
    %16 = vector.load %arg7[%c16, %c0_18] : memref<36x256xf32, #tpu.memory_space<vmem>>, vector<4x256xf32>
    tpu.vector_store %arg7[%c16, %c0_18], %15 {strides = array<i32>} : memref<36x256xf32, #tpu.memory_space<vmem>>, vector<4x256xf32>,
    %c0_19 = arith.constant 0 : index
    %c130 = arith.constant 130 : index
    %17 = vector.load %arg6[%c0_19, %c130] : memref<4x512xf32, #tpu.memory_space<vmem>>, vector<4x256xf32>
    %c20 = arith.constant 20 : index
    %c0_20 = arith.constant 0 : index
    %18 = vector.load %arg7[%c20, %c0_20] : memref<36x256xf32, #tpu.memory_space<vmem>>, vector<4x256xf32>
    tpu.vector_store %arg7[%c20, %c0_20], %17 {strides = array<i32>} : memref<36x256xf32, #tpu.memory_space<vmem>>, vector<4x256xf32>,
    %c0_21 = arith.constant 0 : index
    %c158 = arith.constant 158 : index
    %19 = vector.load %arg6[%c0_21, %c158] : memref<4x512xf32, #tpu.memory_space<vmem>>, vector<4x256xf32>
    %c24 = arith.constant 24 : index
    %c0_22 = arith.constant 0 : index
    %20 = vector.load %arg7[%c24, %c0_22] : memref<36x256xf32, #tpu.memory_space<vmem>>, vector<4x256xf32>
    tpu.vector_store %arg7[%c24, %c0_22], %19 {strides = array<i32>} : memref<36x256xf32, #tpu.memory_space<vmem>>, vector<4x256xf32>,
    %c0_23 = arith.constant 0 : index
    %c160 = arith.constant 160 : index
    %21 = vector.load %arg6[%c0_23, %c160] : memref<4x512xf32, #tpu.memory_space<vmem>>, vector<4x256xf32>
    %c28 = arith.constant 28 : index
    %c0_24 = arith.constant 0 : index
    %22 = vector.load %arg7[%c28, %c0_24] : memref<36x256xf32, #tpu.memory_space<vmem>>, vector<4x256xf32>
    tpu.vector_store %arg7[%c28, %c0_24], %21 {strides = array<i32>} : memref<36x256xf32, #tpu.memory_space<vmem>>, vector<4x256xf32>,
    %c0_25 = arith.constant 0 : index
    %c162 = arith.constant 162 : index
    %23 = vector.load %arg6[%c0_25, %c162] : memref<4x512xf32, #tpu.memory_space<vmem>>, vector<4x256xf32>
    %c32 = arith.constant 32 : index
    %c0_26 = arith.constant 0 : index
    %24 = vector.load %arg7[%c32, %c0_26] : memref<36x256xf32, #tpu.memory_space<vmem>>, vector<4x256xf32>
    tpu.vector_store %arg7[%c32, %c0_26], %23 {strides = array<i32>} : memref<36x256xf32, #tpu.memory_space<vmem>>, vector<4x256xf32>,
    %c0_27 = arith.constant 0 : index
    %c0_28 = arith.constant 0 : index
    %25 = vector.load %arg7[%c0_27, %c0_28] : memref<36x256xf32, #tpu.memory_space<vmem>>, vector<36x256xf32>
    %c0_29 = arith.constant 0 : index
    %c0_30 = arith.constant 0 : index
    %26 = vector.load %arg4[%c0_29, %c0_30] : memref<36x256xf32, #tpu.memory_space<vmem>>, vector<36x256xf32>
    %27 = arith.mulf %25, %26 : vector<36x256xf32>
    %28 = arith.truncf %27 : vector<36x256xf32> to vector<36x256xbf16>
    %c0_31 = arith.constant 0 : index
    %c0_32 = arith.constant 0 : index
    %29 = vector.load %arg2[%c0_31, %c0_32] : memref<16x36xbf16, #tpu.memory_space<vmem>>, vector<16x36xbf16>
    %cst_33 = arith.constant dense<0.000000e+00> : vector<16x256xf32>
    %30 = tpu.matmul %29, %28, %cst_33 {dimension_numbers = #tpu.dot_dimension_numbers<[1], [0], [0], [1], [0, 0, 1, 1], [], []>} : vector<16x36xbf16>, vector<36x256xbf16>, vector<16x256xf32> -> vector<16x256xf32>
    %c0_34 = arith.constant 0 : index
    %c0_35 = arith.constant 0 : index
    %31 = vector.load %arg3[%c0_34, %c0_35] : memref<16x1xf32, #tpu.memory_space<vmem>>, vector<16x1xf32>
    %32 = vector.broadcast %31 : vector<16x1xf32> to vector<16x256xf32>
    %33 = arith.addf %30, %32 : vector<16x256xf32>
    %cst_36 = arith.constant 0.000000e+00 : f32
    %34 = vector.broadcast %cst_36 : f32 to vector<16x256xf32>
    %35 = arith.maximumf %33, %34 : vector<16x256xf32>
    %c0_37 = arith.constant 0 : index
    %c0_38 = arith.constant 0 : index
    %c0_39 = arith.constant 0 : index
    %36 = vector.load %arg5[%c0_37, %c0_38, %c0_39] : memref<1x16x256xf32, #tpu.memory_space<vmem>>, vector<1x16x256xf32>
    %37 = vector.shape_cast %36 : vector<1x16x256xf32> to vector<16x256xf32>
    %38 = vector.shape_cast %35 : vector<16x256xf32> to vector<1x16x256xf32>
    tpu.vector_store %arg5[%c0_37, %c0_38, %c0_39], %38 {strides = array<i32>} : memref<1x16x256xf32, #tpu.memory_space<vmem>>, vector<1x16x256xf32>,
    return
  }
  func.func @transform_0(%arg0: i32) -> (i32, i32, i32) {
    %c0_i32 = arith.constant 0 : i32
    %c0_i32_0 = arith.constant 0 : i32
    %c0_i32_1 = arith.constant 0 : i32
    return %arg0, %c0_i32, %c0_i32_0 : i32, i32, i32
  }
  func.func @transform_1(%arg0: i32) -> (i32, i32) {
    %c0_i32 = arith.constant 0 : i32
    %c0_i32_0 = arith.constant 0 : i32
    %c0_i32_1 = arith.constant 0 : i32
    return %c0_i32, %c0_i32_0 : i32, i32
  }
  func.func @transform_2(%arg0: i32) -> (i32, i32) {
    %c0_i32 = arith.constant 0 : i32
    %c0_i32_0 = arith.constant 0 : i32
    %c0_i32_1 = arith.constant 0 : i32
    return %c0_i32, %c0_i32_0 : i32, i32
  }
  func.func @transform_3(%arg0: i32) -> (i32, i32) {
    %c0_i32 = arith.constant 0 : i32
    %c0_i32_0 = arith.constant 0 : i32
    %c0_i32_1 = arith.constant 0 : i32
    return %c0_i32, %c0_i32_0 : i32, i32
  }
  func.func @transform_4(%arg0: i32) -> (i32, i32, i32) {
    %c0_i32 = arith.constant 0 : i32
    %c0_i32_0 = arith.constant 0 : i32
    %c0_i32_1 = arith.constant 0 : i32
    return %arg0, %c0_i32, %c0_i32_0 : i32, i32, i32
  }
}

</mosaic_0001>

<bundles_post_ra>
// kernel: tpu_custom_call.1
= control target key start
LH: loop header
LB: loop body
LE: loop exit
PB: predicated region body
PF: predicated region fallthrough
CT: control target
= control target key end

     0   :  { %9 = vsyncpa [#allocation5], 0  ;;  %s1042_s0 = inlined_call_operand.vmem [shape: f32[2,4,256], index: 0, kind: input, shape index: {}]   ;;  %s1043_s1 = inlined_call_operand.hbm [shape: bf16[16,36], index: 1, kind: input, shape index: {}]   ;;  %s1044_s2 = inlined_call_operand.vmem [shape: f32[16,1], index: 2, kind: input, shape index: {}]   ;;  %s1045_s3 = inlined_call_operand.hbm [shape: f32[36,256], index: 3, kind: input, shape index: {}]   ;;  %s1046_s4 = inlined_call_operand.hbm [shape: f32[2,16,256], index: 4, kind: output, shape index: {}]  }
   0x1   :  { %10 = vsyncpa [#allocation8], 0 }
   0x2   :  { %11 = vsyncpa [#allocation6], 0 }
   0x3   :  { %13 = vsyncpa [#allocation6 + $0x1], 0  ;;  %s912_s15 = smov 0   ;;  %s914_s16 = smov 0  }
   0x4   :  { %s916_s17 = smov 0   ;;  %s918_s18 = smov 0  }
   0x5 LB: > { %s933_s19 = sadd.s32 4294967295, %s867_s18   ;;  %s634_s20 = sadd.s32 4294967294, %s867_s18   ;;  %s867_s18 = sphi %s918_s18, %s1053_s18   ;;  %s863_s17 = sphi %s916_s17, %s1052_s17   ;;  %s859_s16 = sphi %s914_s16, %s1051_s16   ;;  %s855_s15 = sphi %s912_s15, %s1050_s15  }
   0x6   : > { %s937_s21 = sadd.s32 1, %s867_s18   ;;  %s115_s22 = sadd.s32 1, %s863_s17 }
   0x7   : > { %s112_s23 = ssub.s32 %s867_s18, %s937_s21  ;;  %p125_p0 = scmp.ne.s32.totalorder %s863_s17, %s859_s16 }
   0x8   : > { %p113_p1 = scmp.eq.s32.totalorder %s112_s23, 0  ;;  %p126_p2 = scmp.eq.s32.totalorder %s933_s19, 1 }
   0x9   : > { %p131_p3 = scmp.ne.s32.totalorder %s859_s16, %s855_s15  ;;  %p132_p4 = scmp.eq.s32.totalorder %s634_s20, 1 }
   0xa   : > { %s948_s24 = scalar_select %p113_p1, %s863_s17, %s115_s22  }
   0xb   : > { %p950_p5 = por %p126_p2, %p125_p0  ;;  %p954_p6 = por %p132_p4, %p131_p3 }
   0xc   : > { %p635_p7 = scmp.ge.s32.totalorder %s867_s18, 1  ;;  %p139_p8 = scmp.lt.s32.totalorder %s867_s18, 3 }
   0xd   : > { %p680_p9 = scmp.eq.s32.totalorder %s933_s19, 0  ;;  %s150_s30 = sshll.u32 %s1043_s1, 4  ;;  %s151_s30 = int_to_ptr.hbm [resolvable:$true] %s150_s30 }
   0xe   : > { %p961_p10 = pnand %p635_p7, %p139_p8  ;;  %s869_s5 = smov [#allocation4]  }
   0xf   : > { %s152_s6 = sshll.u32 %s869_s5, 4  ;;  %s167_s9 = sshll.u32 %s1045_s3, 4  ;;  %s153_s6 = int_to_ptr.vmem [resolvable:$true] %s152_s6  ;;  %s168_s9 = int_to_ptr.hbm [resolvable:$true] %s167_s9 }
  0x10   : > { %p669_p11 = pneg %p961_p10  ;;  %s870_s10 = smov 64  }
  0x11   : > { %s871_s11 = smov 4   ;;  %s872_s12 = smov [#allocation7]  }
  0x12   : > { %p670_p12 = pnand %p680_p9, %p669_p11  ;;  %s169_s13 = sshll.u32 %s872_s12, 4  ;;  %s170_s13 = int_to_ptr.vmem [resolvable:$true] %s169_s13 }
  0x13   : > { %s873_s14 = smov 256   ;;  %s874_s20 = smov 16  }
  0x14   : > { %672 = dma.hbm_to_vmem [thread:$0]  (!%p670_p12), %s151_s30, 128, %s153_s6, [#allocation5], %s870_s10, %s870_s10, %s871_s11  }
  0x15   : > { %675 = dma.hbm_to_vmem [thread:$0]  (!%p670_p12), %s168_s9, 1280, %s170_s13, [#allocation8], %s873_s14, %s873_s14, %s874_s20  }
  0x16   : > { %193 = sbr.rel (%p961_p10) target bundleno = 414 (0x19e), region = 36 }
  0x1b   : > { %842 = dma.done.wait (%p680_p9), [#allocation5], 128  }
  0x1c   : > { %844 = vsyncadd (%p680_p9), [#allocation5], 4294967168 }
  0x1d   : > { %846 = dma.done.wait (%p680_p9), [#allocation8], 1280  }
  0x1e   : > { %848 = vsyncadd (%p680_p9), [#allocation8], 4294966016  ;;  %p225_p13 = scmp.lt.s32.totalorder %s933_s19, 1  ;;  %v875_v0 = vmov 0.0   ;;  %s876_s30 = smov 34   ;;  %vm251_vm0 = vcmask 277504  }
  0x1f   : > { %231 = vst [vmem:[#allocation2] sm:$0xf] %v875_v0  ;;  %s877_s5 = smov 32   ;;  %s878_s6 = smov 126   ;;  %vm275_vm1 = vcmask 261120   ;;  %vm355_vm2 = vcmask 1031168  }
  0x20   : > { %s226_s22 = scalar_select %p225_p13, %s933_s19, 1  ;;  %232 = vst [vmem:[#allocation2 + $0xc] sm:$0xf] %v875_v0  ;;  %vm378_vm3 = vcmask 801792   ;;  %vm402_vm4 = vcmask 785408   ;;  %vm425_vm5 = vcmask 769024  }
  0x21   : > { %s879_s7 = smov 98   ;;  %s880_s8 = smov 96   ;;  %vm298_vm6 = vcmask 244736   ;;  %vm322_vm7 = vcmask 15360   ;;  %vm491_vm8 = vcmask 1041408   ;;  %vm487_vm9 = vcmask 293888  }
  0x22   : > { %s656_s23 = sshll.u32 %s226_s22, 3  ;;  %s881_s9 = smov 94  }
  0x23   : > { %s229_s29 = scalar_lea.vmem %s1042_s0, %s656_s23  ;;  %s882_s10 = smov 30  }
  0x24   : > { %v990_v1 = vld [vmem:[%s229_s29] sm:$0xff]  ;;  %s883_s11 = smov 2   ;;  %s222_s22 = sand.u32 1, %s859_s16  }
  0x25   : > { %234 = vst [vmem:[#allocation2 + $0x4] sm:$0xff] %v990_v1  ;;  %s642_s23 = sshll.u32 %s222_s22, 5  ;;  %s658_s28 = sshll.u32 %s933_s19, 5 }
  0x26   : > { %s224_s27 = scalar_lea.vmem [#allocation9], %s642_s23  ;;  %s535_s19 = scalar_lea.sflag [#allocation6], %s222_s22 }
  0x27   : > { %v339_v16 = vld [vmem:[#allocation2 + $0xc] sm:$0xf]  ;;  %s817_s12 = scalar_lea.hbm %s1046_s4, 64 }
  0x28   : > { %v363_v20 = vld [vmem:[#allocation2 + $0xc] sm:$0xf] }
  0x29   : > { %v386_v26 = vld [vmem:[#allocation2 + $0xc] sm:$0xf] }
  0x2a   : > { %v410_v30 = vld [vmem:[#allocation2 + $0xc] sm:$0xf] }
  0x2c   : > { %v235_v2 = vld [vmem:[#allocation2] sm:$0xff]  ;;  %v236_v3 = vld [vmem:[#allocation2 + $0x8] sm:$0xf] }
  0x2d   : > { %239 = vst [vmem:[#allocation1] ss:$2 sm:$0xff] %v235_v2  ;;  %v259_v4 = vld [vmem:[#allocation2 + $0x8] sm:$0xf] }
  0x2e   : > { %241 = vst [vmem:[#allocation1 + $0x10] ss:$2 sm:$0xff] %v236_v3  ;;  %v283_v8 = vld [vmem:[#allocation2 + $0x8] sm:$0xf] }
  0x2f   : > { %v306_v12 = vld [vmem:[#allocation2 + $0x8] sm:$0xf] }
  0x34   : > { %v243_v5 = vld.sshfl [vmem:[#allocation1 + $0x8] sm:$0xff pattern:$0x75316420]  ;;  %v242_v6 = vld.sshfl [vmem:[#allocation1] sm:$0xff pattern:$0x75316420] }
  0x35   : > { %247 = vrot.lane.b32.xlu1 %v243_v5, %s876_s30  ;;  %245 = vrot.lane.b32.xlu0 %v242_v6, %s876_s30  ;;  %263 = vst [vmem:[#allocation1 + $0x1] ss:$2 sm:$0xff] %v235_v2  ;;  %v244_v7 = vld.sshfl [vmem:[#allocation1 + $0x10] sm:$0xff pattern:$0x75316420]  ;;  %v471_v5 = vld [vmem:[%s1044_s2 + $0x8] sm:$0xff] }
  0x36   : > { %249 = vrot.lane.b32.xlu2 %v244_v7, %s876_s30  ;;  %265 = vst [vmem:[#allocation1 + $0x11] ss:$2 sm:$0xff] %v259_v4  ;;  %v470_v4 = vld [vmem:[%s1044_s2] sm:$0xff]  ;;  %v884_v6 = vmov 0  }
  0x37   : > { %735 = vset.pattern.permute.xlu0 %v884_v6  ;;  %736 = vset.pattern.permute.xlu1 %v884_v6 }
  0x3c   : > { %v267_v9 = vld.sshfl [vmem:[#allocation1 + $0x8] sm:$0xff pattern:$0x75316420]  ;;  %v266_v10 = vld.sshfl [vmem:[#allocation1] sm:$0xff pattern:$0x75316420] }
  0x3d   : > { %271 = vrot.lane.b32.xlu1 %v267_v9, %s877_s5  ;;  %269 = vrot.lane.b32.xlu0 %v266_v10, %s877_s5  ;;  %286 = vst [vmem:[#allocation1] ss:$2 sm:$0xff] %v235_v2  ;;  %v268_v11 = vld.sshfl [vmem:[#allocation1 + $0x10] sm:$0xff pattern:$0x75316420] }
  0x3e   : > { %273 = vrot.lane.b32.xlu2 %v268_v11, %s877_s5  ;;  %288 = vst [vmem:[#allocation1 + $0x10] ss:$2 sm:$0xff] %v283_v8  ;;  %v450_v9 = vld [vmem:[#allocation7 + $0x40] sm:$0xf]  ;;  %v451_v11 = vld [vmem:[#allocation7 + $0x48] sm:$0xf]  ;;  %s546_s5 = scalar_lea.hbm %s1046_s4, %s658_s28 }
  0x44   : > { %v289_v13 = vld.sshfl [vmem:[#allocation1] sm:$0xff pattern:$0x75316420]  ;;  %v290_v14 = vld.sshfl [vmem:[#allocation1 + $0x8] sm:$0xff pattern:$0x75316420] }
  0x45   : > { %310 = vst [vmem:[#allocation1 + $0x1] ss:$2 sm:$0xff] %v235_v2  ;;  %v291_v15 = vld.sshfl [vmem:[#allocation1 + $0x10] sm:$0xff pattern:$0x75316420] }
  0x46   : > { %312 = vst [vmem:[#allocation1 + $0x11] ss:$2 sm:$0xff] %v306_v12 }
  0x4c   : > { %v313_v17 = vld.sshfl [vmem:[#allocation1] sm:$0xff pattern:$0x75316420]  ;;  %v314_v18 = vld.sshfl [vmem:[#allocation1 + $0x8] sm:$0xff pattern:$0x75316420] }
  0x4d   : > { %331 = vst [vmem:[#allocation1] ss:$2 sm:$0xff] %v990_v1  ;;  %v315_v19 = vld.sshfl [vmem:[#allocation1 + $0x10] sm:$0xff pattern:$0x75316420] }
  0x4e   : > { %345 = vst [vmem:[#allocation1 + $0x11] ss:$2 sm:$0xff] %v339_v16 }
  0x54   : > { %v332_v21 = vld.sshfl [vmem:[#allocation1] sm:$0xff pattern:$0x75316420]  ;;  %v333_v22 = vld.sshfl [vmem:[#allocation1 + $0x8] sm:$0xff pattern:$0x75316420] }
  0x55   : > { %343 = vst [vmem:[#allocation1 + $0x1] ss:$2 sm:$0xff] %v990_v1  ;;  %v348_v23 = vld.sshfl [vmem:[#allocation1 + $0x10] sm:$0xff pattern:$0x75316420] }
  0x56   : > { %336 = vst [vmem:[#allocation3 + $0x48] sm:$0xf] %v332_v21  ;;  %353 = vrot.lane.b32.xlu2 %v348_v23, %s878_s6 }
  0x57   : > { %337 = vst [vmem:[#allocation3 + $0x28] sm:$0xf] %v333_v22  ;;  %v449_v22 = vld [vmem:[#allocation7 + $0x38] sm:$0xff] }
  0x58   : > { %368 = vst [vmem:[#allocation1 + $0x10] ss:$2 sm:$0xff] %v363_v20 }
  0x5c   : > { %v346_v24 = vld.sshfl [vmem:[#allocation1] sm:$0xff pattern:$0x75316420]  ;;  %v347_v25 = vld.sshfl [vmem:[#allocation1 + $0x8] sm:$0xff pattern:$0x75316420] }
  0x5d   : > { %349 = vrot.lane.b32.xlu1 %v346_v24, %s878_s6  ;;  %366 = vst [vmem:[#allocation1] ss:$2 sm:$0xff] %v990_v1 }
  0x5e   : > { %351 = vrot.lane.b32.xlu2 %v347_v25, %s878_s6  ;;  %s547_s6 = sshll.u32 %s224_s27, 4  ;;  %s548_s6 = int_to_ptr.vmem [resolvable:$true] %s547_s6 }
  0x5f   : > { %v371_v27 = vld.sshfl [vmem:[#allocation1 + $0x10] sm:$0xff pattern:$0x75316420] }
  0x60   : > { %392 = vst [vmem:[#allocation1 + $0x11] ss:$2 sm:$0xff] %v386_v26  ;;  %v446_v26 = vld [vmem:[#allocation7 + $0x20] sm:$0xff] }
  0x64   : > { %v370_v28 = vld.sshfl [vmem:[#allocation1 + $0x8] sm:$0xff pattern:$0x75316420]  ;;  %v369_v29 = vld.sshfl [vmem:[#allocation1] sm:$0xff pattern:$0x75316420] }
  0x65   : > { %374 = vrot.lane.b32.xlu1 %v370_v28, %s879_s7  ;;  %372 = vrot.lane.b32.xlu0 %v369_v29, %s879_s7  ;;  %390 = vst [vmem:[#allocation1 + $0x1] ss:$2 sm:$0xff] %v990_v1 }
  0x66   : > { %376 = vrot.lane.b32.xlu2 %v371_v27, %s879_s7  ;;  %s549_s7 = sshll.u32 %s546_s5, 4  ;;  %s550_s7 = int_to_ptr.hbm [resolvable:$true] %s549_s7 }
  0x67   : > { %v395_v31 = vld.sshfl [vmem:[#allocation1 + $0x10] sm:$0xff pattern:$0x75316420] }
  0x68   : > { %415 = vst [vmem:[#allocation1 + $0x10] ss:$2 sm:$0xff] %v410_v30  ;;  %v447_v30 = vld [vmem:[#allocation7 + $0x28] sm:$0xff] }
  0x6c   : > { %v393_v32 = vld.sshfl [vmem:[#allocation1] sm:$0xff pattern:$0x75316420]  ;;  %v394_v33 = vld.sshfl [vmem:[#allocation1 + $0x8] sm:$0xff pattern:$0x75316420] }
  0x6d   : > { %396 = vrot.lane.b32.xlu0 %v393_v32, %s880_s8  ;;  %413 = vst [vmem:[#allocation1] ss:$2 sm:$0xff] %v990_v1 }
  0x6e   : > { %400 = vrot.lane.b32.xlu2 %v395_v31, %s880_s8 }
  0x6f   : > { %v418_v34 = vld.sshfl [vmem:[#allocation1 + $0x10] sm:$0xff pattern:$0x75316420] }
  0x70   : > { %423 = vrot.lane.b32.xlu1 %v418_v34, %s881_s9 }
  0x74   : > { %v416_v35 = vld.sshfl [vmem:[#allocation1] sm:$0xff pattern:$0x75316420]  ;;  %v417_v36 = vld.sshfl [vmem:[#allocation1 + $0x8] sm:$0xff pattern:$0x75316420] }
  0x75   : > { %419 = vrot.lane.b32.xlu0 %v416_v35, %s881_s9 }
  0x76   : > { %296 = vrot.lane.b32.xlu2 %v291_v15, %s882_s10 }
  0x78   : > { %398 = vrot.lane.b32.xlu1 %v394_v33, %s880_s8  ;;  %s811_s8 = sshra.s32 %s550_s7, 4  ;;  %s812_s8 = int_to_ptr.hbm [resolvable:$true] %s811_s8 }
  0x79   : > { %p818_p3 = scmp.lt.s32.totalorder %s812_s8, %s1046_s4 }
  0x7d   : > { %421 = vrot.lane.b32.xlu0 %v417_v36, %s881_s9  ;;  %s813_s9 = scalar_lea.hbm %s812_s8, 32 }
  0x7e   : > { %320 = vrot.lane.b32.xlu2 %v315_v19, %s883_s11  ;;  %p814_p0 = scmp.ne.s32.totalorder %s812_s8, %s813_s9  ;;  %p819_p4 = scmp.lt.s32.totalorder %s817_s12, %s813_s9 }
  0x80   : > { %294 = vrot.lane.b32.xlu1 %v290_v14, %s882_s10  ;;  %p815_p1 = pnand %p814_p0, %p950_p5  ;;  %p820_p7 = por %p819_p4, %p818_p3 }
  0x82   : > { %p816_p2 = pneg %p815_p1 }
  0x84   : > { %p821_p8 = pnand %p820_p7, %p816_p2 }
  0x85   : > { %292 = vrot.lane.b32.xlu0 %v289_v13, %s882_s10 }
  0x88   : > { %318 = vrot.lane.b32.xlu1 %v314_v18, %s883_s11  ;;  %v448_v18 = vld [vmem:[#allocation7 + $0x30] sm:$0xff] }
  0x8d   : > { %316 = vrot.lane.b32.xlu0 %v313_v17, %s883_s11 }
  0x90   : > { %v250_v37 = vpop.permute.xlu2 %249  ;;  %479 = vperm.xlu1 %736, %v471_v5  }
  0x95   : > { %474 = vperm.xlu0 %735, %v470_v4  }
  0x98   : > { %v274_v38 = vpop.permute.xlu2 %273 }
  0xa7   : > { %v248_v39 = vpop.permute.xlu1 %247  ;;  %v246_v40 = vpop.permute.xlu0 %245 }
  0xa8   : > { %v253_v41 = vsel %vm251_vm0, %v248_v39, %v250_v37  ;;  %v252_v42 = vsel %vm251_vm0, %v246_v40, %v248_v39 }
  0xa9   : > { %257 = vst [vmem:[#allocation3] sm:$0xf] %v253_v41  ;;  %v443_v41 = vld [vmem:[#allocation7 + $0x8] sm:$0xff] }
  0xaa   : > { %256 = vst [vmem:[#allocation3 + $0x30] sm:$0xf] %v252_v42  ;;  %v445_v42 = vld [vmem:[#allocation7 + $0x18] sm:$0xff] }
  0xaf   : > { %v272_v43 = vpop.permute.xlu1 %271  ;;  %v270_v44 = vpop.permute.xlu0 %269 }
  0xb0   : > { %v277_v45 = vsel %vm275_vm1, %v272_v43, %v274_v38  ;;  %v276_v46 = vsel %vm275_vm1, %v270_v44, %v272_v43  ;;  %v354_v47 = vpop.permute.xlu2 %353 }
  0xb1   : > { %281 = vst [vmem:[#allocation3] sm:$0xf0] %v277_v45 }
  0xb2   : > { %280 = vst [vmem:[#allocation3 + $0x30] sm:$0xf0] %v276_v46 }
  0xb8   : > { %v352_v48 = vpop.permute.xlu2 %351  ;;  %v433_v40 = vld [vmem:[#allocation3] sm:$0xff] }
  0xb9   : > { %v357_v49 = vsel %vm355_vm2, %v352_v48, %v354_v47  ;;  %v453_v44 = vmul.f32 %v443_v41, %v433_v40  ;;  %v432_v47 = vld [vmem:[#allocation3 + $0x30] sm:$0xff] }
  0xba   : > { %361 = vst [vmem:[#allocation3 + $0x28] sm:$0xf0] %v357_v49  ;;  %v444_v49 = vld [vmem:[#allocation7 + $0x10] sm:$0xff] }
  0xc0   : > { %v377_v52 = vpop.permute.xlu2 %376 }
  0xc1   : > { %v437_v29 = vld [vmem:[#allocation3 + $0x28] sm:$0xff] }
  0xc2   : > { %v457_v36 = vmul.f32 %v447_v30, %v437_v29 }
  0xc8   : > { %v401_v59 = vpop.permute.xlu2 %400 }
  0xcf   : > { %v350_v50 = vpop.permute.xlu1 %349 }
  0xd0   : > { %v356_v51 = vsel %vm355_vm2, %v350_v50, %v352_v48  ;;  %v297_v0 = vpop.permute.xlu2 %296  ;;  %v442_v48 = vld [vmem:[#allocation7] sm:$0xff]  ;;  %v657_v50 = vld [vmem:[#allocation4] sm:$0xff] }
  0xd1   : > { %360 = vst [vmem:[#allocation3 + $0x48] sm:$0xf0] %v356_v51 }
  0xd7   : > { %v375_v53 = vpop.permute.xlu1 %374  ;;  %v373_v54 = vpop.permute.xlu0 %372 }
  0xd8   : > { %v379_v55 = vsel %vm378_vm3, %v373_v54, %v375_v53  ;;  %v380_v56 = vsel %vm378_vm3, %v375_v53, %v377_v52  ;;  %v321_v12 = vpop.permute.xlu2 %320  ;;  %v436_v25 = vld [vmem:[#allocation3 + $0x48] sm:$0xff]  ;;  %v452_v52 = vmul.f32 %v442_v48, %v432_v47 }
  0xd9   : > { %383 = vst [vmem:[#allocation3 + $0x8] sm:$0xf] %v379_v55  ;;  %v456_v34 = vmul.f32 %v446_v26, %v436_v25 }
  0xda   : > { %384 = vst [vmem:[#allocation3 + $0x20] sm:$0xf] %v380_v56 }
  0xdf   : > { %v397_v57 = vpop.permute.xlu0 %396 }
  0xe2   : > { %v424_v58 = vpop.permute.xlu1 %423 }
  0xe7   : > { %v420_v60 = vpop.permute.xlu0 %419 }
  0xea   : > { %v399_v61 = vpop.permute.xlu1 %398 }
  0xeb   : > { %v403_v62 = vsel %vm402_vm4, %v397_v57, %v399_v61  ;;  %v404_v63 = vsel %vm402_vm4, %v399_v61, %v401_v59 }
  0xec   : > { %407 = vst [vmem:[#allocation3 + $0x8] sm:$0xf0] %v403_v62 }
  0xed   : > { %408 = vst [vmem:[#allocation3 + $0x20] sm:$0xf0] %v404_v63 }
  0xef   : > { %v422_v1 = vpop.permute.xlu0 %421 }
  0xf0   : > { %v426_v2 = vsel %vm425_vm5, %v420_v60, %v422_v1  ;;  %v427_v3 = vsel %vm425_vm5, %v422_v1, %v424_v58 }
  0xf1   : > { %430 = vst [vmem:[#allocation3 + $0x40] sm:$0xf] %v426_v2 }
  0xf2   : > { %v295_v7 = vpop.permute.xlu1 %294  ;;  %431 = vst [vmem:[#allocation3 + $0x38] sm:$0xf] %v427_v3 }
  0xf3   : > { %v300_v8 = vsel %vm298_vm6, %v295_v7, %v297_v0  ;;  %v438_v17 = vld [vmem:[#allocation3 + $0x8] sm:$0xff] }
  0xf4   : > { %304 = vst [vmem:[#allocation3 + $0x10] sm:$0xf] %v300_v8  ;;  %v439_v21 = vld [vmem:[#allocation3 + $0x20] sm:$0xff]  ;;  %v458_v28 = vmul.f32 %v448_v18, %v438_v17 }
  0xf5   : > { %v459_v32 = vmul.f32 %v449_v22, %v439_v21 }
  0xf6   : > { %v464_v38 = vpack.c.bf16 %v458_v28, %v456_v34 }
  0xf7   : > { %v293_v10 = vpop.permute.xlu0 %292  ;;  %v465_v39 = vpack.c.bf16 %v459_v32, %v457_v36 }
  0xf8   : > { %v299_v13 = vsel %vm298_vm6, %v293_v10, %v295_v7  ;;  %v440_v14 = vld [vmem:[#allocation3 + $0x40] sm:$0xf] }
  0xf9   : > { %303 = vst [vmem:[#allocation3 + $0x18] sm:$0xf] %v299_v13  ;;  %v460_v15 = vmul.f32 %v450_v9, %v440_v14  ;;  %v441_v16 = vld [vmem:[#allocation3 + $0x38] sm:$0xf] }
  0xfa   : > { %v319_v19 = vpop.permute.xlu1 %318  ;;  %v461_v20 = vmul.f32 %v451_v11, %v441_v16 }
  0xfb   : > { %v324_v23 = vsel %vm322_vm7, %v319_v19, %v321_v12  ;;  %v466_v24 = vpack.c.bf16 %v460_v15, %v460_v15 }
  0xfc   : > { %328 = vst [vmem:[#allocation3 + $0x10] sm:$0xf0] %v324_v23  ;;  %v467_v27 = vpack.c.bf16 %v461_v20, %v461_v20 }
  0xfd   : > { %v493_v31 = vsel %vm491_vm8, %v466_v24, 0 }
  0xfe   : > { %503 = vmatpush.bf16.msra.mxu0 %v493_v31  ;;  %v496_v33 = vsel %vm491_vm8, %v467_v27, 0 }
  0xff   : > { %517 = vmatpush.bf16.msra.mxu1 %v496_v33  ;;  %v317_v35 = vpop.permute.xlu0 %316 }
 0x100   : > { %v323_v37 = vsel %vm322_vm7, %v317_v35, %v319_v19 }
 0x101   : > { %327 = vst [vmem:[#allocation3 + $0x18] sm:$0xf0] %v323_v37 }
 0x102   : > { %504 = vmatpush.bf16.msra.mxu0 %v464_v38  ;;  %v480_v61 = vpop.permute.xlu1 %479 }
 0x103   : > { %518 = vmatpush.bf16.msra.mxu1 %v465_v39  ;;  %v435_v43 = vld [vmem:[#allocation3 + $0x10] sm:$0xff] }
 0x104   : > { %v455_v45 = vmul.f32 %v445_v42, %v435_v43 }
 0x106   : > { %v463_v46 = vpack.c.bf16 %v455_v45, %v453_v44 }
 0x107   : > { %v475_v55 = vpop.permute.xlu0 %474 }
 0x108   : > { %519 = vmatpush.bf16.msra.mxu1 %v463_v46  ;;  %v434_v51 = vld [vmem:[#allocation3 + $0x18] sm:$0xff] }
 0x109   : > { %v454_v53 = vmul.f32 %v444_v49, %v434_v51 }
 0x10b   : > { %650 = vmatmul.msk.bf16.vlgmr.msra.gmra.mxu1 %vm487_vm9, %v657_v50  ;;  %v462_v54 = vpack.c.bf16 %v454_v53, %v452_v52 }
 0x10d   : > { %505 = vmatpush.bf16.msra.mxu0 %v462_v54 }
 0x110   : > { %649 = vmatmul.msk.bf16.vlgmr.msra.gmra.mxu0 %vm487_vm9, %v657_v50 }
 0x188   : > { %v521_v56 = vpop.f32.mrf.mxu1 }
 0x189   : > { %v522_v57 = vadd.f32 %v521_v56, %v475_v55 }
 0x18b   : > { %v527_v58 = vmax.f32 %v522_v57, 0.0 }
 0x18d   : > { %531 = vst [vmem:[%s224_s27 + $0x8] sm:$0xff] %v527_v58  ;;  %v507_v59 = vpop.f32.mrf.mxu0 }
 0x18e   : > { %v508_v60 = vadd.f32 %v507_v59, %v475_v55 }
 0x190   : > { %v526_v62 = vmax.f32 %v508_v60, 0.0  ;;  %v523_v63 = vpop.f32.mrf.mxu1 }
 0x191   : > { %v524_v0 = vadd.f32 %v523_v63, %v480_v61 }
 0x192   : > { %530 = vst [vmem:[%s224_s27] sm:$0xff] %v526_v62 }
 0x193   : > { %v529_v1 = vmax.f32 %v524_v0, 0.0 }
 0x195   : > { %533 = vst [vmem:[%s224_s27 + $0x18] sm:$0xff] %v529_v1  ;;  %v509_v2 = vpop.f32.mrf.mxu0 }
 0x196   : > { %v510_v3 = vadd.f32 %v509_v2, %v480_v61 }
 0x198   : > { %v528_v4 = vmax.f32 %v510_v3, 0.0 }
 0x19a   : > { %532 = vst [vmem:[%s224_s27 + $0x10] sm:$0xff] %v528_v4 }
 0x19b   : > { %824 = shalt.err (!%p821_p8)
}
 0x19c   : > { %s885_s20 = smov 256   ;;  %s886_s22 = smov 16  }
 0x19d   : > { %667 = dma.vmem_to_hbm [thread:$0]  (%p950_p5), %s548_s6, 512, %s550_s7, %s535_s19, %s885_s20, %s885_s20, %s886_s22  }
 0x19e PF: > { %p684_p9 = scmp.ge.s32.totalorder %s867_s18, 2  ;;  %s564_s23 = sand.u32 1, %s855_s15  }
 0x19f   : > { %s565_s27 = scalar_lea.sflag [#allocation6], %s564_s23 }
 0x1a0   : > { %p677_p10 = pnand %p684_p9, %p954_p6 }
 0x1a2   : > { %p678_p11 = pneg %p677_p10 }
 0x1a4   : > { %850 = dma.done.wait (%p678_p11), %s565_s27, 512  }
 0x1a5   : > { %852 = vsyncadd (%p678_p11), %s565_s27, 4294966784  ;;  %p16_p12 = scmp.ge.s32.totalorder %s937_s21, 4   ;;  %s1050_s15 = smov %s859_s16 }
 0x1a6   : > { %s1051_s16 = smov %s863_s17  ;;  %s1052_s17 = smov %s948_s24 }
 0x1a7   : > { %s1053_s18 = smov %s937_s21  ;;  %18 = sbr.rel (!%p16_p12) target bundleno = 5 (0x5), region = 92 }
 0x1ac   :  { %571 = vsyncpa [#allocation5], 1 }
 0x1ad   :  { %573 = vsyncpa [#allocation5 + $0x1], 1 }
 0x1ae   :  { %574 = vsyncpa [#allocation8], 1 }
 0x1af   :  { %575 = vsyncpa [#allocation6], 1 }
 0x1b0   :  { %577 = vsyncpa [#allocation6 + $0x1], 1 }

</bundles_post_ra>
